<compile_context>
chip_gen: v7x
topology: tpu7x:2x2x1
jax: 0.10.0
libtpu: 0.0.40
codegen_flags: <defaults>
</compile_context>

<pallas_src>
import functools

import jax
import jax.numpy as jnp
import numpy as np
from jax.experimental import pallas as pl
from jax.experimental.pallas import tpu as pltpu


def _round_up(n, m):
    return ((n + m - 1) // m) * m


# ----------------------------- Pallas kernel -----------------------------

def _grid_sample_kernel(pts_ref, grid_ref, out_ref, acc_ref,
                        *, sx, sy, h, w, token_format):
    """One (batch, point-tile, HW-chunk) grid step.

    pts_ref : (1, TP, 2)    raw token coords for this point tile
    grid_ref: (1, THW, C)   one HW chunk of the (HW, C)-flattened feature grid
    out_ref : (1, TP, C)    output embeddings (block resident across HW axis)
    acc_ref : (TP, C) f32   VMEM accumulator
    """
    k = pl.program_id(2)
    nk = pl.num_programs(2)
    tp = pts_ref.shape[1]
    thw = grid_ref.shape[1]

    @pl.when(k == 0)
    def _init():
        acc_ref[...] = jnp.zeros_like(acc_ref)

    pts = pts_ref[0]                              # (TP, 2)
    x = pts[:, 0:1] / sx                          # (TP, 1)
    y = pts[:, 1:2] / sy

    # points outside [0, W-1] x [0, H-1] get a zero embedding
    valid = ((x >= 0.0) & (y >= 0.0) &
             (x <= (w - 1.0)) & (y <= (h - 1.0))).astype(jnp.float32)

    fx, cx = jnp.floor(x), jnp.ceil(x)
    fy, cy = jnp.floor(y), jnp.ceil(y)

    # global flat-grid column ids covered by this HW chunk (built in-kernel,
    # nothing index/mask-like is streamed from HBM)
    col = jax.lax.broadcasted_iota(jnp.int32, (tp, thw), 1) + k * thw

    scatter = jnp.zeros((tp, thw), jnp.float32)
    wsum = jnp.zeros_like(x)
    for px, py in ((fx, fy), (fx, cy), (cx, fy), (cx, cy)):
        # The torch code applies fmod(., W) then clamps negatives to 0.  For
        # every point with non-zero weight that is the identity, and
        # zero-weight (out-of-range) points contribute exactly 0 regardless,
        # so a clip is output-equivalent and keeps the flat index in range.
        gx = jnp.clip(px.astype(jnp.int32), 0, w - 1)
        gy = jnp.clip(py.astype(jnp.int32), 0, h - 1)
        dx = x - gx.astype(jnp.float32)
        dy = y - gy.astype(jnp.float32)
        wgt = valid / (jnp.sqrt(dx * dx + dy * dy) + 1e-10)   # (TP, 1)
        wsum = wsum + wgt
        if token_format == "xy":
            idx = gy * w + gx
        else:                                                 # 'hw'
            idx = gx * w + gy
        scatter = scatter + jnp.where(col == idx, wgt, 0.0)

    # (TP, THW) @ (THW, C) on the MXU, f32 accumulation
    acc_ref[...] += jnp.dot(scatter, grid_ref[0],
                            preferred_element_type=jnp.float32)

    @pl.when(k == nk - 1)
    def _finalize():
        # per-point normalization applied once; reciprocal goes to the EUP
        norm = jnp.where(wsum == 0.0, 1.0, wsum)
        out_ref[0] = (acc_ref[...] *
                      pl.reciprocal(norm, approx=True)).astype(out_ref.dtype)


# ----------------------------- wrapper -----------------------------

def feature_grid_2d_embedding(tk_codes, feat_grid, *, stride=(1, 1),
                              token_format="xy", tp=None, thw=None):
    """Pallas forward of FeatureGrid2DEmbedding.

    tk_codes : (..., >=2)  token (x, y) codes, leading dims reshape to (B, P)
    feat_grid: (B, C, H, W)
    returns  : (..., C)
    """
    if token_format not in ("xy", "hw"):
        raise ValueError("token_format should be 'xy' or 'hw'")
    if isinstance(stride, int):
        stride = (stride, stride)

    B, C, H, W = feat_grid.shape
    HW = H * W

    tk = tk_codes[..., :2].astype(jnp.float32)
    lead_shape = tk.shape[:-1]
    pts = tk.reshape(B, -1, 2)
    P = pts.shape[1]

    # (B, C, H, W) -> (B, H*W, C): single layout pass so the kernel sees
    # lane-dense (THW, C) tiles that feed the MXU directly.
    grid_flat = jnp.transpose(feat_grid, (0, 2, 3, 1)).reshape(B, HW, C)

    # Tile sizes (re-derive against the VMEM budget if the caps are raised).
    TP = tp if tp is not None else min(_round_up(P, 8), 128)
    THW = thw if thw is not None else min(_round_up(HW, 8), 512)
    P_pad = _round_up(P, TP)
    HW_pad = _round_up(HW, THW)
    if P_pad != P:
        pts = jnp.pad(pts, ((0, 0), (0, P_pad - P), (0, 0)))
    if HW_pad != HW:
        # zero rows are never referenced (flat indices stay < H*W)
        grid_flat = jnp.pad(grid_flat, ((0, 0), (0, HW_pad - HW), (0, 0)))

    kernel = functools.partial(
        _grid_sample_kernel, sx=float(stride[0]), sy=float(stride[1]),
        h=H, w=W, token_format=token_format)

    out = pl.pallas_call(
        kernel,
        out_shape=jax.ShapeDtypeStruct((B, P_pad, C), jnp.float32),
        grid=(B, P_pad // TP, HW_pad // THW),
        in_specs=[
            pl.BlockSpec((1, TP, 2), lambda b, p, k: (b, p, 0)),
            pl.BlockSpec((1, THW, C), lambda b, p, k: (b, k, 0)),
        ],
        out_specs=pl.BlockSpec((1, TP, C), lambda b, p, k: (b, p, 0)),
        scratch_shapes=[pltpu.VMEM((TP, C), jnp.float32)],
        compiler_params=pltpu.CompilerParams(
            dimension_semantics=("parallel", "parallel", "arbitrary"),
            vmem_limit_bytes=32 * 1024 * 1024,   # explicit budget w/ headroom
        ),
    )(pts, grid_flat)

    out = out[:, :P, :]
    return out.reshape(*lead_shape, C)


# ----------------------------- pure-JAX reference -----------------------------

def reference_forward(tk_codes, feat_grid, *, stride, token_format="xy"):
    """Faithful pure-JAX port of FeatureGrid2DEmbedding.forward / grid_sample."""
    if isinstance(stride, int):
        stride = (stride, stride)
    B, C, H, W = feat_grid.shape
    tk = tk_codes[..., :2].astype(jnp.float32)
    lead_shape = tk.shape[:-1]
    pts = tk.reshape(B, -1, 2)
    P = pts.shape[1]
    x = pts[..., 0] / stride[0]
    y = pts[..., 1] / stride[1]

    valid = ((x >= 0) & (y >= 0) & (x <= W - 1) & (y <= H - 1)).astype(jnp.float32)

    cx = jnp.stack([jnp.floor(x), jnp.floor(x), jnp.ceil(x), jnp.ceil(x)], -1)  # (B,P,4)
    cy = jnp.stack([jnp.floor(y), jnp.ceil(y), jnp.floor(y), jnp.ceil(y)], -1)
    gx = jnp.maximum(jnp.fmod(cx.astype(jnp.int32), W), 0)
    gy = jnp.maximum(jnp.fmod(cy.astype(jnp.int32), H), 0)

    dx = x[..., None] - gx.astype(jnp.float32)
    dy = y[..., None] - gy.astype(jnp.float32)
    wgt = valid[..., None] / (jnp.sqrt(dx * dx + dy * dy) + 1e-10)    # (B,P,4)
    s = jnp.sum(wgt, axis=-1, keepdims=True)
    s = jnp.where(s == 0.0, 1.0, s)
    wgt = wgt / s

    if token_format == "xy":
        idx = gy * W + gx
    else:
        idx = gx * W + gy                                             # (B,P,4)

    grid_flat = jnp.transpose(feat_grid, (0, 2, 3, 1)).reshape(B, H * W, C)
    vals = jax.vmap(lambda g, i: g[i])(grid_flat, idx.reshape(B, 4 * P))
    vals = vals.reshape(B, P, 4, C)
    out = jnp.sum(vals * wgt[..., None], axis=2)
    return out.reshape(*lead_shape, C)


# ----------------------------- main -----------------------------

if __name__ == "__main__":
    # small shapes: batch=2, n_embd(C)=128, 16x16 feature grid, 8 tokens/batch
    B, C, H, W = 2, 128, 16, 16
    N = 8
    stride = (2, 2)
    token_format = "xy"

    key = jax.random.PRNGKey(0)
    k_grid, k_pts = jax.random.split(key)
    feat_grid = jax.random.normal(k_grid, (B, C, H, W), jnp.float32)
    # token coords in the unscaled space (divided by stride inside the kernel):
    # fractional, exactly-on-node, and out-of-range points are all exercised.
    tk_codes = jax.random.uniform(
        k_pts, (B, N, 2), jnp.float32,
        minval=-3.0, maxval=(W - 1) * stride[0] + 3.0)
    tk_codes = tk_codes.at[0, 0].set(jnp.array([8.0, 6.0]))    # exact grid node
    tk_codes = tk_codes.at[1, 1].set(jnp.array([-5.0, 4.0]))   # out of range -> 0

    y = feature_grid_2d_embedding(tk_codes, feat_grid, stride=stride,
                                  token_format=token_format, thw=128)
    y = jax.block_until_ready(y)

    y_ref = reference_forward(tk_codes, feat_grid, stride=stride,
                              token_format=token_format)
    np.testing.assert_allclose(np.asarray(y), np.asarray(y_ref),
                               rtol=1e-2, atol=1e-2)
    assert y.shape == (B, N, C)

    print("KERNEL_OK")
</pallas_src>

<mosaic_0001>
module attributes {stable_mosaic.version = 11 : i64} {
  func.func @_grid_sample_kernel(%arg0: i32, %arg1: i32, %arg2: i32, %arg3: memref<1x8x2xf32, #tpu.memory_space<vmem>>, %arg4: memref<1x128x128xf32, #tpu.memory_space<vmem>>, %arg5: memref<1x8x128xf32, #tpu.memory_space<vmem>>, %arg6: memref<8x128xf32, #tpu.memory_space<vmem>>) attributes {dimension_semantics = [#tpu.dimension_semantics<parallel>, #tpu.dimension_semantics<parallel>, #tpu.dimension_semantics<arbitrary>], iteration_bounds = array<i64: 2, 1, 2>, scalar_prefetch = 0 : i64, scratch_operands = 1 : i64, tpu.core_type = #tpu.core_type<tc>, window_params = [{transform_indices = @transform_0, window_bounds = array<i64: 1, 8, 2>}, {transform_indices = @transform_1, window_bounds = array<i64: 1, 128, 128>}, {transform_indices = @transform_2, window_bounds = array<i64: 1, 8, 128>}]} {
    %c0_i32 = arith.constant 0 : i32
    %0 = arith.cmpi eq, %arg2, %c0_i32 : i32
    %1 = arith.extui %0 : i1 to i32
    %c0_i32_0 = arith.constant 0 : i32
    %2 = arith.cmpi ne, %1, %c0_i32_0 : i32
    scf.if %2 {
      %cst_45 = arith.constant 0.000000e+00 : f32
      %171 = vector.broadcast %cst_45 : f32 to vector<8x128xf32>
      %c0_46 = arith.constant 0 : index
      %c0_47 = arith.constant 0 : index
      %172 = vector.load %arg6[%c0_46, %c0_47] : memref<8x128xf32, #tpu.memory_space<vmem>>, vector<8x128xf32>
      tpu.vector_store %arg6[%c0_46, %c0_47], %171 {strides = array<i32>} : memref<8x128xf32, #tpu.memory_space<vmem>>, vector<8x128xf32>,
    } else {
    }
    %c0 = arith.constant 0 : index
    %c0_1 = arith.constant 0 : index
    %c0_2 = arith.constant 0 : index
    %3 = vector.load %arg3[%c0, %c0_1, %c0_2] : memref<1x8x2xf32, #tpu.memory_space<vmem>>, vector<1x8x2xf32>
    %4 = vector.shape_cast %3 : vector<1x8x2xf32> to vector<8x2xf32>
    %5 = vector.extract_strided_slice %4 {offsets = [0, 0], sizes = [8, 1], strides = [1, 1]} : vector<8x2xf32> to vector<8x1xf32>
    %cst = arith.constant 2.000000e+00 : f32
    %6 = vector.broadcast %cst : f32 to vector<8x1xf32>
    %7 = arith.divf %5, %6 : vector<8x1xf32>
    %8 = vector.extract_strided_slice %4 {offsets = [0, 1], sizes = [8, 1], strides = [1, 1]} : vector<8x2xf32> to vector<8x1xf32>
    %cst_3 = arith.constant 2.000000e+00 : f32
    %9 = vector.broadcast %cst_3 : f32 to vector<8x1xf32>
    %10 = arith.divf %8, %9 : vector<8x1xf32>
    %cst_4 = arith.constant 0.000000e+00 : f32
    %11 = vector.broadcast %cst_4 : f32 to vector<8x1xf32>
    %12 = arith.cmpf oge, %7, %11 : vector<8x1xf32>
    %cst_5 = arith.constant 0.000000e+00 : f32
    %13 = vector.broadcast %cst_5 : f32 to vector<8x1xf32>
    %14 = arith.cmpf oge, %10, %13 : vector<8x1xf32>
    %15 = arith.andi %12, %14 : vector<8x1xi1>
    %cst_6 = arith.constant 1.500000e+01 : f32
    %16 = vector.broadcast %cst_6 : f32 to vector<8x1xf32>
    %17 = arith.cmpf ole, %7, %16 : vector<8x1xf32>
    %18 = arith.andi %15, %17 : vector<8x1xi1>
    %cst_7 = arith.constant 1.500000e+01 : f32
    %19 = vector.broadcast %cst_7 : f32 to vector<8x1xf32>
    %20 = arith.cmpf ole, %10, %19 : vector<8x1xf32>
    %21 = arith.andi %18, %20 : vector<8x1xi1>
    %22 = arith.extui %21 : vector<8x1xi1> to vector<8x1xi32>
    %23 = arith.sitofp %22 : vector<8x1xi32> to vector<8x1xf32>
    %24 = math.floor %7 : vector<8x1xf32>
    %25 = math.ceil %7 : vector<8x1xf32>
    %26 = math.floor %10 : vector<8x1xf32>
    %27 = math.ceil %10 : vector<8x1xf32>
    %28 = tpu.iota {dimensions = array<i32: 1>} : vector<8x128xi32>
    %c128_i32 = arith.constant 128 : i32
    %29 = arith.muli %arg2, %c128_i32 : i32
    %30 = vector.broadcast %29 : i32 to vector<8x128xi32>
    %31 = arith.addi %28, %30 : vector<8x128xi32>
    %cst_8 = arith.constant 0.000000e+00 : f32
    %32 = vector.broadcast %cst_8 : f32 to vector<8x128xf32>
    %cst_9 = arith.constant 0.000000e+00 : f32
    %33 = vector.broadcast %cst_9 : f32 to vector<8x1xf32>
    %34 = arith.fptosi %24 : vector<8x1xf32> to vector<8x1xi32>
    %c0_i32_10 = arith.constant 0 : i32
    %c15_i32 = arith.constant 15 : i32
    %35 = vector.broadcast %c0_i32_10 : i32 to vector<8x1xi32>
    %36 = arith.maxsi %35, %34 : vector<8x1xi32>
    %37 = vector.broadcast %c15_i32 : i32 to vector<8x1xi32>
    %38 = arith.minsi %37, %36 : vector<8x1xi32>
    %39 = arith.fptosi %26 : vector<8x1xf32> to vector<8x1xi32>
    %c0_i32_11 = arith.constant 0 : i32
    %c15_i32_12 = arith.constant 15 : i32
    %40 = vector.broadcast %c0_i32_11 : i32 to vector<8x1xi32>
    %41 = arith.maxsi %40, %39 : vector<8x1xi32>
    %42 = vector.broadcast %c15_i32_12 : i32 to vector<8x1xi32>
    %43 = arith.minsi %42, %41 : vector<8x1xi32>
    %44 = arith.sitofp %38 : vector<8x1xi32> to vector<8x1xf32>
    %45 = arith.subf %7, %44 : vector<8x1xf32>
    %46 = arith.sitofp %43 : vector<8x1xi32> to vector<8x1xf32>
    %47 = arith.subf %10, %46 : vector<8x1xf32>
    %48 = arith.mulf %45, %45 : vector<8x1xf32>
    %49 = arith.mulf %47, %47 : vector<8x1xf32>
    %50 = arith.addf %48, %49 : vector<8x1xf32>
    %51 = math.sqrt %50 : vector<8x1xf32>
    %cst_13 = arith.constant 1.000000e-10 : f32
    %52 = vector.broadcast %cst_13 : f32 to vector<8x1xf32>
    %53 = arith.addf %51, %52 : vector<8x1xf32>
    %54 = arith.divf %23, %53 : vector<8x1xf32>
    %55 = arith.addf %33, %54 : vector<8x1xf32>
    %c16_i32 = arith.constant 16 : i32
    %56 = vector.broadcast %c16_i32 : i32 to vector<8x1xi32>
    %57 = arith.muli %43, %56 : vector<8x1xi32>
    %58 = arith.addi %57, %38 : vector<8x1xi32>
    %59 = vector.broadcast %58 : vector<8x1xi32> to vector<8x128xi32>
    %60 = arith.cmpi eq, %31, %59 : vector<8x128xi32>
    %cst_14 = arith.constant 0.000000e+00 : f32
    %61 = vector.shape_cast %54 : vector<8x1xf32> to vector<8x1xf32>
    %62 = vector.broadcast %61 : vector<8x1xf32> to vector<8x128xf32>
    %63 = vector.broadcast %cst_14 : f32 to vector<8x128xf32>
    %64 = arith.select %60, %62, %63 : vector<8x128xi1>, vector<8x128xf32>
    %65 = arith.addf %32, %64 : vector<8x128xf32>
    %66 = arith.fptosi %24 : vector<8x1xf32> to vector<8x1xi32>
    %c0_i32_15 = arith.constant 0 : i32
    %c15_i32_16 = arith.constant 15 : i32
    %67 = vector.broadcast %c0_i32_15 : i32 to vector<8x1xi32>
    %68 = arith.maxsi %67, %66 : vector<8x1xi32>
    %69 = vector.broadcast %c15_i32_16 : i32 to vector<8x1xi32>
    %70 = arith.minsi %69, %68 : vector<8x1xi32>
    %71 = arith.fptosi %27 : vector<8x1xf32> to vector<8x1xi32>
    %c0_i32_17 = arith.constant 0 : i32
    %c15_i32_18 = arith.constant 15 : i32
    %72 = vector.broadcast %c0_i32_17 : i32 to vector<8x1xi32>
    %73 = arith.maxsi %72, %71 : vector<8x1xi32>
    %74 = vector.broadcast %c15_i32_18 : i32 to vector<8x1xi32>
    %75 = arith.minsi %74, %73 : vector<8x1xi32>
    %76 = arith.sitofp %70 : vector<8x1xi32> to vector<8x1xf32>
    %77 = arith.subf %7, %76 : vector<8x1xf32>
    %78 = arith.sitofp %75 : vector<8x1xi32> to vector<8x1xf32>
    %79 = arith.subf %10, %78 : vector<8x1xf32>
    %80 = arith.mulf %77, %77 : vector<8x1xf32>
    %81 = arith.mulf %79, %79 : vector<8x1xf32>
    %82 = arith.addf %80, %81 : vector<8x1xf32>
    %83 = math.sqrt %82 : vector<8x1xf32>
    %cst_19 = arith.constant 1.000000e-10 : f32
    %84 = vector.broadcast %cst_19 : f32 to vector<8x1xf32>
    %85 = arith.addf %83, %84 : vector<8x1xf32>
    %86 = arith.divf %23, %85 : vector<8x1xf32>
    %87 = arith.addf %55, %86 : vector<8x1xf32>
    %c16_i32_20 = arith.constant 16 : i32
    %88 = vector.broadcast %c16_i32_20 : i32 to vector<8x1xi32>
    %89 = arith.muli %75, %88 : vector<8x1xi32>
    %90 = arith.addi %89, %70 : vector<8x1xi32>
    %91 = vector.broadcast %90 : vector<8x1xi32> to vector<8x128xi32>
    %92 = arith.cmpi eq, %31, %91 : vector<8x128xi32>
    %cst_21 = arith.constant 0.000000e+00 : f32
    %93 = vector.shape_cast %86 : vector<8x1xf32> to vector<8x1xf32>
    %94 = vector.broadcast %93 : vector<8x1xf32> to vector<8x128xf32>
    %95 = vector.broadcast %cst_21 : f32 to vector<8x128xf32>
    %96 = arith.select %92, %94, %95 : vector<8x128xi1>, vector<8x128xf32>
    %97 = arith.addf %65, %96 : vector<8x128xf32>
    %98 = arith.fptosi %25 : vector<8x1xf32> to vector<8x1xi32>
    %c0_i32_22 = arith.constant 0 : i32
    %c15_i32_23 = arith.constant 15 : i32
    %99 = vector.broadcast %c0_i32_22 : i32 to vector<8x1xi32>
    %100 = arith.maxsi %99, %98 : vector<8x1xi32>
    %101 = vector.broadcast %c15_i32_23 : i32 to vector<8x1xi32>
    %102 = arith.minsi %101, %100 : vector<8x1xi32>
    %103 = arith.fptosi %26 : vector<8x1xf32> to vector<8x1xi32>
    %c0_i32_24 = arith.constant 0 : i32
    %c15_i32_25 = arith.constant 15 : i32
    %104 = vector.broadcast %c0_i32_24 : i32 to vector<8x1xi32>
    %105 = arith.maxsi %104, %103 : vector<8x1xi32>
    %106 = vector.broadcast %c15_i32_25 : i32 to vector<8x1xi32>
    %107 = arith.minsi %106, %105 : vector<8x1xi32>
    %108 = arith.sitofp %102 : vector<8x1xi32> to vector<8x1xf32>
    %109 = arith.subf %7, %108 : vector<8x1xf32>
    %110 = arith.sitofp %107 : vector<8x1xi32> to vector<8x1xf32>
    %111 = arith.subf %10, %110 : vector<8x1xf32>
    %112 = arith.mulf %109, %109 : vector<8x1xf32>
    %113 = arith.mulf %111, %111 : vector<8x1xf32>
    %114 = arith.addf %112, %113 : vector<8x1xf32>
    %115 = math.sqrt %114 : vector<8x1xf32>
    %cst_26 = arith.constant 1.000000e-10 : f32
    %116 = vector.broadcast %cst_26 : f32 to vector<8x1xf32>
    %117 = arith.addf %115, %116 : vector<8x1xf32>
    %118 = arith.divf %23, %117 : vector<8x1xf32>
    %119 = arith.addf %87, %118 : vector<8x1xf32>
    %c16_i32_27 = arith.constant 16 : i32
    %120 = vector.broadcast %c16_i32_27 : i32 to vector<8x1xi32>
    %121 = arith.muli %107, %120 : vector<8x1xi32>
    %122 = arith.addi %121, %102 : vector<8x1xi32>
    %123 = vector.broadcast %122 : vector<8x1xi32> to vector<8x128xi32>
    %124 = arith.cmpi eq, %31, %123 : vector<8x128xi32>
    %cst_28 = arith.constant 0.000000e+00 : f32
    %125 = vector.shape_cast %118 : vector<8x1xf32> to vector<8x1xf32>
    %126 = vector.broadcast %125 : vector<8x1xf32> to vector<8x128xf32>
    %127 = vector.broadcast %cst_28 : f32 to vector<8x128xf32>
    %128 = arith.select %124, %126, %127 : vector<8x128xi1>, vector<8x128xf32>
    %129 = arith.addf %97, %128 : vector<8x128xf32>
    %130 = arith.fptosi %25 : vector<8x1xf32> to vector<8x1xi32>
    %c0_i32_29 = arith.constant 0 : i32
    %c15_i32_30 = arith.constant 15 : i32
    %131 = vector.broadcast %c0_i32_29 : i32 to vector<8x1xi32>
    %132 = arith.maxsi %131, %130 : vector<8x1xi32>
    %133 = vector.broadcast %c15_i32_30 : i32 to vector<8x1xi32>
    %134 = arith.minsi %133, %132 : vector<8x1xi32>
    %135 = arith.fptosi %27 : vector<8x1xf32> to vector<8x1xi32>
    %c0_i32_31 = arith.constant 0 : i32
    %c15_i32_32 = arith.constant 15 : i32
    %136 = vector.broadcast %c0_i32_31 : i32 to vector<8x1xi32>
    %137 = arith.maxsi %136, %135 : vector<8x1xi32>
    %138 = vector.broadcast %c15_i32_32 : i32 to vector<8x1xi32>
    %139 = arith.minsi %138, %137 : vector<8x1xi32>
    %140 = arith.sitofp %134 : vector<8x1xi32> to vector<8x1xf32>
    %141 = arith.subf %7, %140 : vector<8x1xf32>
    %142 = arith.sitofp %139 : vector<8x1xi32> to vector<8x1xf32>
    %143 = arith.subf %10, %142 : vector<8x1xf32>
    %144 = arith.mulf %141, %141 : vector<8x1xf32>
    %145 = arith.mulf %143, %143 : vector<8x1xf32>
    %146 = arith.addf %144, %145 : vector<8x1xf32>
    %147 = math.sqrt %146 : vector<8x1xf32>
    %cst_33 = arith.constant 1.000000e-10 : f32
    %148 = vector.broadcast %cst_33 : f32 to vector<8x1xf32>
    %149 = arith.addf %147, %148 : vector<8x1xf32>
    %150 = arith.divf %23, %149 : vector<8x1xf32>
    %151 = arith.addf %119, %150 : vector<8x1xf32>
    %c16_i32_34 = arith.constant 16 : i32
    %152 = vector.broadcast %c16_i32_34 : i32 to vector<8x1xi32>
    %153 = arith.muli %139, %152 : vector<8x1xi32>
    %154 = arith.addi %153, %134 : vector<8x1xi32>
    %155 = vector.broadcast %154 : vector<8x1xi32> to vector<8x128xi32>
    %156 = arith.cmpi eq, %31, %155 : vector<8x128xi32>
    %cst_35 = arith.constant 0.000000e+00 : f32
    %157 = vector.shape_cast %150 : vector<8x1xf32> to vector<8x1xf32>
    %158 = vector.broadcast %157 : vector<8x1xf32> to vector<8x128xf32>
    %159 = vector.broadcast %cst_35 : f32 to vector<8x128xf32>
    %160 = arith.select %156, %158, %159 : vector<8x128xi1>, vector<8x128xf32>
    %161 = arith.addf %129, %160 : vector<8x128xf32>
    %c0_36 = arith.constant 0 : index
    %c0_37 = arith.constant 0 : index
    %162 = vector.load %arg6[%c0_36, %c0_37] : memref<8x128xf32, #tpu.memory_space<vmem>>, vector<8x128xf32>
    %c0_38 = arith.constant 0 : index
    %c0_39 = arith.constant 0 : index
    %c0_40 = arith.constant 0 : index
    %163 = vector.load %arg4[%c0_38, %c0_39, %c0_40] : memref<1x128x128xf32, #tpu.memory_space<vmem>>, vector<1x128x128xf32>
    %164 = vector.shape_cast %163 : vector<1x128x128xf32> to vector<128x128xf32>
    %cst_41 = arith.constant dense<0.000000e+00> : vector<8x128xf32>
    %165 = tpu.matmul %161, %164, %cst_41 {dimension_numbers = #tpu.dot_dimension_numbers<[1], [0], [0], [1], [0, 0, 1, 1], [], []>} : vector<8x128xf32>, vector<128x128xf32>, vector<8x128xf32> -> vector<8x128xf32>
    %166 = arith.addf %162, %165 : vector<8x128xf32>
    %c0_42 = arith.constant 0 : index
    %c0_43 = arith.constant 0 : index
    %167 = vector.load %arg6[%c0_42, %c0_43] : memref<8x128xf32, #tpu.memory_space<vmem>>, vector<8x128xf32>
    tpu.vector_store %arg6[%c0_42, %c0_43], %166 {strides = array<i32>} : memref<8x128xf32, #tpu.memory_space<vmem>>, vector<8x128xf32>,
    %c1_i32 = arith.constant 1 : i32
    %168 = arith.cmpi eq, %arg2, %c1_i32 : i32
    %169 = arith.extui %168 : i1 to i32
    %c0_i32_44 = arith.constant 0 : i32
    %170 = arith.cmpi ne, %169, %c0_i32_44 : i32
    scf.if %170 {
      %cst_45 = arith.constant 0.000000e+00 : f32
      %171 = vector.broadcast %cst_45 : f32 to vector<8x1xf32>
      %172 = arith.cmpf oeq, %151, %171 : vector<8x1xf32>
      %cst_46 = arith.constant 1.000000e+00 : f32
      %173 = vector.broadcast %cst_46 : f32 to vector<8x1xf32>
      %174 = arith.select %172, %173, %151 : vector<8x1xi1>, vector<8x1xf32>
      %c0_47 = arith.constant 0 : index
      %c0_48 = arith.constant 0 : index
      %175 = vector.load %arg6[%c0_47, %c0_48] : memref<8x128xf32, #tpu.memory_space<vmem>>, vector<8x128xf32>
      %176 = tpu.reciprocal %174 {approx = true} : vector<8x1xf32> -> vector<8x1xf32>
      %177 = vector.broadcast %176 : vector<8x1xf32> to vector<8x128xf32>
      %178 = arith.mulf %175, %177 : vector<8x128xf32>
      %c0_49 = arith.constant 0 : index
      %c0_50 = arith.constant 0 : index
      %c0_51 = arith.constant 0 : index
      %179 = vector.load %arg5[%c0_49, %c0_50, %c0_51] : memref<1x8x128xf32, #tpu.memory_space<vmem>>, vector<1x8x128xf32>
      %180 = vector.shape_cast %179 : vector<1x8x128xf32> to vector<8x128xf32>
      %181 = vector.shape_cast %178 : vector<8x128xf32> to vector<1x8x128xf32>
      tpu.vector_store %arg5[%c0_49, %c0_50, %c0_51], %181 {strides = array<i32>} : memref<1x8x128xf32, #tpu.memory_space<vmem>>, vector<1x8x128xf32>,
    } else {
    }
    return
  }
  func.func @transform_0(%arg0: i32, %arg1: i32, %arg2: i32) -> (i32, i32, i32) {
    %c0_i32 = arith.constant 0 : i32
    %c0_i32_0 = arith.constant 0 : i32
    return %arg0, %arg1, %c0_i32 : i32, i32, i32
  }
  func.func @transform_1(%arg0: i32, %arg1: i32, %arg2: i32) -> (i32, i32, i32) {
    %c0_i32 = arith.constant 0 : i32
    %c0_i32_0 = arith.constant 0 : i32
    return %arg0, %arg2, %c0_i32 : i32, i32, i32
  }
  func.func @transform_2(%arg0: i32, %arg1: i32, %arg2: i32) -> (i32, i32, i32) {
    %c0_i32 = arith.constant 0 : i32
    %c0_i32_0 = arith.constant 0 : i32
    return %arg0, %arg1, %c0_i32 : i32, i32, i32
  }
}

</mosaic_0001>

<bundles_post_ra>
// kernel: tpu_custom_call.1
= control target key start
LH: loop header
LB: loop body
LE: loop exit
PB: predicated region body
PF: predicated region fallthrough
CT: control target
= control target key end

     0   :  { %7 = vsyncpa [#allocation4], 0  ;;  %s1324_s0 = inlined_call_operand.vmem [shape: f32[2,8,2], index: 0, kind: input, shape index: {}]   ;;  %s1325_s1 = inlined_call_operand.hbm [shape: f32[2,256,128], index: 1, kind: input, shape index: {}]   ;;  %s1326_s2 = inlined_call_operand.hbm [shape: f32[2,8,128], index: 2, kind: output, shape index: {}]  }
   0x1   :  { %9 = vsyncpa [#allocation4 + $0x1], 0 }
   0x2   :  { %10 = vsyncpa [#allocation5], 0 }
   0x3   :  { %12 = vsyncpa [#allocation5 + $0x1], 0  ;;  %s1014_s9 = smov 0   ;;  %s1016_s10 = smov 0  }
   0x4   :  { %s1018_s11 = smov 0   ;;  %s1020_s12 = smov 0  }
   0x5   :  { %s1022_s13 = smov 0   ;;  %s1024_s14 = smov 0  }
   0x6   :  { %s1026_s15 = smov 0   ;;  %s1028_s16 = smov 0  }
   0x7   :  { %s1030_s17 = smov 0   ;;  %s1032_s18 = smov 0  }
   0x8   :  { %s1034_s19 = smov 0  }
   0x9 LB: > { %s594_s20 = sadd.s32 4294967295, %s984_s19   ;;  %s595_s21 = sadd.s32 4294967294, %s984_s19   ;;  %s984_s19 = sphi %s1034_s19, %s18_s19   ;;  %s980_s18 = sphi %s1032_s18, %s1350_s18   ;;  %s976_s17 = sphi %s1030_s17, %s1349_s17   ;;  %s972_s16 = sphi %s1028_s16, %s1348_s16   ;;  %s968_s15 = sphi %s1026_s15, %s1347_s15   ;;  %s964_s14 = sphi %s1024_s14, %s1346_s14   ;;  %s960_s13 = sphi %s1022_s13, %s1345_s13   ;;  %s956_s12 = sphi %s1020_s12, %s1344_s12   ;;  %s952_s11 = sphi %s1018_s11, %s1343_s11   ;;  %s948_s10 = sphi %s1016_s10, %s1342_s10   ;;  %s944_s9 = sphi %s1014_s9, %s1341_s9  }
   0xa   : > { %s30_s22 = sadd.s32 1, %s976_s17  ;;  %s37_s23 = sadd.s32 1, %s980_s18 }
   0xb   : > { %p31_p0 = scmp.ge.s32.totalorder %s30_s22, 2  ;;  %s74_s24 = sadd.s32 1, %s964_s14 }
   0xc   : > { %p81_p1 = scmp.ne.s32.totalorder %s964_s14, %s960_s13  ;;  %p82_p2 = scmp.eq.s32.totalorder %s984_s19, 0 }
   0xd   : > { %s1352_s22 = smov (%p31_p0, %s30_s22), 0  ;;  %s1354_s23 = smov (!%p31_p0, %s37_s23), %s980_s18 }
   0xe   : > { %1330 = sst [smem:[#allocation9_spill]] %s1352_s22  ;;  %s70_s25 = ssub.s32 %s976_s17, %s1352_s22 }
   0xf   : > { %p1080_p3 = por %p82_p2, %p81_p1  ;;  %p39_p4 = scmp.ge.s32.totalorder %s1354_s23, 2 }
  0x10   : > { %p87_p5 = scmp.ne.s32.totalorder %s960_s13, %s956_s12  ;;  %p88_p6 = scmp.eq.s32.totalorder %s594_s20, 0 }
  0x11   : > { %s102_s27 = sadd.s32 1, %s952_s11  ;;  %s1356_s23 = smov (%p39_p4, %s1354_s23), 0 }
  0x12   : > { %1332 = sst [smem:[#allocation10_spill]] %s1356_s23  ;;  %p1088_p7 = por %p88_p6, %p87_p5 }
  0x13   : > { %p112_p8 = scmp.ne.s32.totalorder %s952_s11, %s948_s10  ;;  %s69_s29 = ssub.s32 %s980_s18, %s1356_s23 }
  0x14   : > { %p113_p9 = scmp.eq.s32.totalorder %s594_s20, 3  ;;  %s71_s30 = sor.u32 %s70_s25, %s69_s29 }
  0x15   : > { %p100_p10 = scmp.eq.s32.totalorder %s69_s29, 0  ;;  %p72_p11 = scmp.eq.s32.totalorder %s71_s30, 0 }
  0x16   : > { %p1096_p12 = por %p113_p9, %p112_p8  ;;  %p118_p13 = scmp.ne.s32.totalorder %s948_s10, %s944_s9 }
  0x17   : > { %s1101_s4 = scalar_select %p100_p10, %s952_s11, %s102_s27  }
  0x18   : > { %s1334_s3 = scalar_select %p1096_p12, 1, 0 }
  0x19   : > { %s1104_s5 = scalar_select %p72_p11, %s964_s14, %s74_s24  }
  0x1a   : > { %p119_p0 = scmp.eq.s32.totalorder %s595_s21, 3  ;;  %p706_p1 = scmp.lt.s32.totalorder %s984_s19, 4 }
  0x1b   : > { %s149_s7 = sand.u32 1, %s964_s14   ;;  %s599_s12 = sshll.u32 %s976_s17, 4 }
  0x1c   : > { %p1109_p2 = por %p119_p0, %p118_p13  ;;  %s598_s8 = sshll.u32 %s149_s7, 7 }
  0x1d   : > { %s600_s20 = sshll.u32 %s980_s18, 5  ;;  %s153_s25 = scalar_lea.vmem [#allocation3], %s598_s8 }
  0x1e   : > { %s1335_s6 = scalar_select %p1109_p2, 1, 0 }
  0x1f   : > { %s162_s29 = sshll.u32 %s153_s25, 4  ;;  %s159_s30 = sadd.s32 %s600_s20, %s599_s12  ;;  %s1116_s29 = int_to_ptr.vmem [resolvable:$true] %s162_s29 }
  0x20   : > { %s601_s27 = sshll.u32 %s159_s30, 7  ;;  %p1120_p4 = pnand %p706_p1, %p1080_p3 }
  0x21   : > { %s1127_s22 = scalar_lea.hbm %s1325_s1, %s601_s27  ;;  %s1129_s8 = scalar_lea.sflag [#allocation4], %s149_s7 }
  0x22   : > { %s832_s12 = scalar_lea.hbm %s1127_s22, 2048  ;;  %p834_p3 = pneg %p1120_p4 }
  0x23   : > { %p833_p5 = scmp.ne.s32.totalorder %s1127_s22, %s832_s12  ;;  %s837_s20 = scalar_lea.hbm %s1325_s1, 8192 }
  0x24   : > { %p838_p9 = scmp.lt.u32.totalorder %s1127_s22, %s1325_s1  ;;  %p839_p10 = scmp.lt.u32.totalorder %s837_s20, %s832_s12 }
  0x25   : > { %p835_p6 = pnand %p834_p3, %p833_p5  ;;  %p841_p13 = scmp.lt.u32.totalorder %s832_s12, %s1127_s22 }
  0x26   : > { %p840_p11 = por %p839_p10, %p838_p9 }
  0x27   : > { %p836_p8 = pneg %p835_p6 }
  0x28   : > { %p842_p0 = por %p841_p13, %p840_p11 }
  0x2a   : > { %p843_p1 = pnand %p842_p0, %p836_p8 }
  0x2c   : > { %846 = shalt.err (!%p843_p1)
}
  0x2d   : > { %s847_s7 = scalar_lea.vmem %s1116_s29, 2048  ;;  %s986_s27 = smov [#allocation3]  }
  0x2e   : > { %p848_p5 = scmp.ne.s32.totalorder %s1116_s29, %s847_s7  ;;  %s852_s21 = sshll.u32 %s986_s27, 4  ;;  %s853_s21 = int_to_ptr.vmem [resolvable:$false] %s852_s21 }
  0x2f   : > { %s854_s26 = scalar_lea.vmem %s853_s21, 4096  ;;  %p855_p12 = scmp.lt.s32.totalorder %s1116_s29, %s853_s21 }
  0x30   : > { %p850_p6 = pnand %p848_p5, %p834_p3  ;;  %p856_p9 = scmp.lt.s32.totalorder %s854_s26, %s847_s7 }
  0x32   : > { %p851_p2 = pneg %p850_p6  ;;  %p857_p10 = por %p856_p9, %p855_p12 }
  0x34   : > { %p858_p11 = pnand %p857_p10, %p851_p2 }
  0x36   : > { %861 = shalt.err (!%p858_p11)
}
  0x37   : > { %s987_s12 = smov 128   ;;  %s988_s23 = smov 8  }
  0x38   : > { %701 = dma.hbm_to_vmem [thread:$0]  (!%p1120_p4), %s1127_s22, 2048, %s1116_s29, %s1129_s8, %s987_s12, %s987_s12, %s988_s23  }
  0x39   : > { %p602_p3 = scmp.ge.s32.totalorder %s984_s19, 1  ;;  %p170_p8 = scmp.lt.s32.totalorder %s984_s19, 5 }
  0x3b   : > { %p171_p13 = pnand %p602_p3, %p170_p8 }
  0x3c   : > { %s176_s20 = sand.u32 (!%p171_p13), 1, %s960_s13  }
  0x3d   : > { %174 = sbr.rel (%p171_p13) target bundleno = 636 (0x27c), region = 28  ;;  %s603_s25 = sshll.u32 (!%p171_p13), %s176_s20, 7 }
  0x3e   : > { %s177_s30 = scalar_lea.sflag (!%p171_p13), [#allocation4], %s176_s20  ;;  %s1160_s7 = scalar_lea.vmem (!%p171_p13), [#allocation3], %s603_s25 }
  0x44   : > { %935 = dma.done.wait (%p1088_p7), %s177_s30, 2048  }
  0x45   : > { %937 = vsyncadd (%p1088_p7), %s177_s30, 4294965248  ;;  %s205_s22 = sand.u32 1, %s948_s10   ;;  %p208_p12 = scmp.lt.s32.totalorder %s972_s16, 1 }
  0x46   : > { %s1170_s29 = sshll.u32 %s205_s22, 3  ;;  %p606_p2 = scmp.ne.s32.totalorder %s968_s15, 0 }
  0x47   : > { %s209_s24 = scalar_select %p208_p12, %s972_s16, 1 }
  0x48   : > { %s207_s12 = scalar_lea.vmem [#allocation6], %s1170_s29  ;;  %219 = sbr.rel (%p606_p2) target bundleno = 79 (0x4f), region = 36  ;;  %v989_v0 = vmov (!%p606_p2), 0.0  }
  0x49   : > { %s605_s8 = sshll.u32 %s209_s24, 3  ;;  %220 = vst [vmem:[#allocation2] sm:$0xff] (!%p606_p2), %v989_v0 }
  0x4a   : > { %s214_s26 = scalar_lea.vmem %s1324_s0, %s605_s8 }
  0x4f PF: > { %v221_v1 = vld [vmem:[%s214_s26] sm:$0xff]  ;;  %v990_v5 = vmov 0   ;;  %s991_s28 = smov 127   ;;  %s992_s23 = smov 1   ;;  %v993_v22 = vmov 1   ;;  %v373_v23 = vld [vmem:[%s1160_s7] sm:$0xff] }
  0x50   : > { %v1178_v2 = vmul.f32 0.5, %v221_v1  ;;  %808 = vset.pattern.permute.xlu1 %v993_v22  ;;  %807 = vset.pattern.permute.xlu0 %v993_v22  ;;  %v374_v24 = vld [vmem:[%s1160_s7 + $0x8] sm:$0xff]  ;;  %v375_v25 = vld [vmem:[%s1160_s7 + $0x10] sm:$0xff]  ;;  %v994_v26 = vmov 0.0|0.0   ;;  %v376_v28 = vld [vmem:[%s1160_s7 + $0x18] sm:$0xff]  ;;  %s608_s20 = sshll.u32 %s968_s15, 7 }
  0x51   : > { %666 = vmatprep.subr.bf16.mxu0 %v994_v26  ;;  %v667_v27 = vpack.c.bf16 %v374_v24, %v373_v23  ;;  %v670_v29 = vpack.c.bf16 %v376_v28, %v375_v25  ;;  %v377_v45 = vld [vmem:[%s1160_s7 + $0x20] sm:$0xff]  ;;  %v378_v46 = vld [vmem:[%s1160_s7 + $0x28] sm:$0xff]  ;;  %v379_v53 = vld [vmem:[%s1160_s7 + $0x30] sm:$0xff]  ;;  %p609_p7 = scmp.ne.s32.totalorder %s968_s15, 1 }
  0x52   : > { %v239_v3 = vfloor.f32 %v1178_v2  ;;  %v240_v4 = vceil.f32 %v1178_v2  ;;  %vm224_vm0 = vcmp.ge.f32.partialorder %v1178_v2, 0.0  ;;  %vm230_vm1 = vcmp.le.f32.partialorder %v1178_v2, 15.0  ;;  %v380_v54 = vld [vmem:[%s1160_s7 + $0x38] sm:$0xff]  ;;  %v381_v55 = vld [vmem:[%s1160_s7 + $0x40] sm:$0xff]  ;;  %v382_v59 = vld [vmem:[%s1160_s7 + $0x48] sm:$0xff] }
  0x53   : > { %v225_v6 = vsel %vm224_vm0, 1, %v990_v5  ;;  %v232_v9 = vsel %vm230_vm1, 1, %v990_v5  ;;  %668 = vmatpush3.bf16.msra.mxu0 %v667_v27  ;;  %v673_v47 = vpack.c.bf16 %v378_v46, %v377_v45  ;;  %v676_v58 = vpack.c.bf16 %v380_v54, %v379_v53  ;;  %v383_v23 = vld [vmem:[%s1160_s7 + $0x50] sm:$0xff]  ;;  %v384_v24 = vld [vmem:[%s1160_s7 + $0x58] sm:$0xff] }
  0x54   : > { %v690_v7 = vtrunc.f32 %v239_v3  ;;  %v692_v8 = vtrunc.f32 %v240_v4  ;;  %226 = vrot.lane.b32.xlu1 %v225_v6, %s991_s28  ;;  %669 = vmatprep.subr.bf16.mxu0 %v994_v26  ;;  %v679_v4 = vpack.c.bf16 %v382_v59, %v381_v55  ;;  %v682_v27 = vpack.c.bf16 %v384_v24, %v383_v23 }
  0x56   : > { %v691_v10 = vcvt.f32.s32 %v690_v7  ;;  %v693_v11 = vcvt.f32.s32 %v692_v8 }
  0x57   : > { %671 = vmatpush3.bf16.msra.mxu0 %v670_v29 }
  0x58   : > { %vm247_vm2 = vcmp.gt.s32.totalorder %v691_v10, 0  ;;  %vm286_vm3 = vcmp.gt.s32.totalorder %v693_v11, 0  ;;  %233 = vrot.lane.b32.xlu1 %v232_v9, %s991_s28  ;;  %672 = vmatprep.subr.bf16.mxu0 %v994_v26 }
  0x59   : > { %v248_v12 = vsel %vm247_vm2, %v691_v10, 0  ;;  %v287_v13 = vsel %vm286_vm3, %v693_v11, 0 }
  0x5a   : > { %vm249_vm4 = vcmp.lt.s32.totalorder %v248_v12, 15  ;;  %vm288_vm5 = vcmp.lt.s32.totalorder %v287_v13, 15 }
  0x5b   : > { %v250_v14 = vsel %vm249_vm4, %v248_v12, 15  ;;  %v1190_v15 = vsel %vm288_vm5, %v287_v13, 15  ;;  %674 = vmatpush3.bf16.msra.mxu0 %v673_v47 }
  0x5c   : > { %v251_v16 = vcvt.s32.f32 %v250_v14  ;;  %v290_v17 = vcvt.s32.f32 %v1190_v15  ;;  %334 = vrot.lane.b32.xlu1 %v1190_v15, %s992_s23  ;;  %v270_v38 = vmul.u32 16, %v250_v14  ;;  %v309_v39 = vmul.u32 16, %v1190_v15  ;;  %675 = vmatprep.subr.bf16.mxu0 %v994_v26 }
  0x5e   : > { %v252_v18 = vsub.f32 %v1178_v2, %v251_v16  ;;  %v291_v19 = vsub.f32 %v1178_v2, %v290_v17 }
  0x5f   : > { %677 = vmatpush3.bf16.msra.mxu0 %v676_v58 }
  0x60   : > { %v253_v20 = vmul.f32 %v252_v18, %v252_v18  ;;  %v292_v21 = vmul.f32 %v291_v19, %v291_v19  ;;  %678 = vmatprep.subr.bf16.mxu0 %v994_v26  ;;  %v995_v18 = vmov 0.0  }
  0x62   : > { %255 = vrot.lane.b32.xlu0 %v253_v20, %s991_s28 }
  0x63   : > { %680 = vmatpush3.bf16.msra.mxu0 %v679_v4 }
  0x64   : > { %681 = vmatprep.subr.bf16.mxu0 %v994_v26 }
  0x66   : > { %294 = vrot.lane.b32.xlu0 %v292_v21, %s991_s28 }
  0x67   : > { %683 = vmatpush3.bf16.msra.mxu0 %v682_v27 }
  0x68   : > { %684 = vmatprep.subr.bf16.mxu0 %v994_v26 }
  0x6a   : > { %271 = vrot.lane.b32.xlu0 %v250_v14, %s992_s23 }
  0xc6   : > { %v1205_v30 = vpop.permute.xlu1 %226 }
  0xc7   : > { %vm228_vm6 = vcmp.ne.s32.totalorder %v1205_v30, 0 }
  0xc8   : > { %vm229_vm14 = vmand %vm224_vm0, %vm228_vm6 }
  0xc9   : > { %vm231_vm2 = vmand %vm229_vm14, %vm230_vm1  ;;  %vm996_vm1 = vmmov 0  }
  0xca   : > { %v1207_v34 = vpop.permute.xlu1 %233  ;;  %663 = vmatprep.mubr.msk.f32.mxu0 %vm996_vm1, %v995_v18 }
  0xcb   : > { %vm235_vm3 = vcmp.ne.s32.totalorder %v1207_v34, 0 }
  0xcc   : > { %vm236_vm0 = vmand %vm231_vm2, %vm235_vm3 }
  0xcd   : > { %v607_v19 = vsel %vm236_vm0, 1.0, %v995_v18 }
  0xce   : > { %v1213_v41 = vpop.permute.xlu1 %334 }
  0xcf   : > { %v336_v44 = vadd.s32 %v1213_v41, %v270_v38 }
  0xd4   : > { %v256_v31 = vpop.permute.xlu0 %255 }
  0xd5   : > { %v258_v32 = vadd.f32 %v256_v31, %v253_v20  ;;  %v322_v33 = vadd.f32 %v292_v21, %v256_v31  ;;  %v385_v31 = vld [vmem:[%s1160_s7 + $0x60] sm:$0xff] }
  0xd7   : > { %813 = vrsqrt.f32 %v258_v32  ;;  %vm261_vm7 = vcmp.eq.f32.partialorder %v258_v32, inf  ;;  %v264_v51 = vand.u32 2147483648, %v258_v32  ;;  %vm325_vm8 = vcmp.eq.f32.partialorder %v322_v33, inf }
  0xd8   : > { %815 = vrsqrt.f32 %v322_v33  ;;  %v295_v35 = vpop.permute.xlu0 %294  ;;  %v328_v56 = vand.u32 2147483648, %v322_v33  ;;  %vm263_vm9 = vcmp.eq.f32.partialorder %v258_v32, 0.0  ;;  %vm327_vm11 = vcmp.eq.f32.partialorder %v322_v33, 0.0 }
  0xd9   : > { %v297_v36 = vadd.f32 %v295_v35, %v253_v20  ;;  %v1209_v37 = vadd.f32 %v295_v35, %v292_v21 }
  0xdb   : > { %817 = vrsqrt.f32 %v297_v36  ;;  %vm300_vm10 = vcmp.eq.f32.partialorder %v297_v36, inf  ;;  %v303_v6 = vand.u32 2147483648, %v297_v36  ;;  %vm351_vm12 = vcmp.eq.f32.partialorder %v1209_v37, inf }
  0xdc   : > { %819 = vrsqrt.f32 %v1209_v37  ;;  %v272_v40 = vpop.permute.xlu0 %271  ;;  %v354_v9 = vand.u32 2147483648, %v1209_v37  ;;  %vm302_vm13 = vcmp.eq.f32.partialorder %v297_v36, 0.0  ;;  %vm353_vm15 = vcmp.eq.f32.partialorder %v1209_v37, 0.0 }
  0xdd   : > { %v273_v42 = vadd.s32 %v272_v40, %v270_v38  ;;  %v310_v43 = vadd.s32 %v309_v39, %v272_v40  ;;  %v387_v38 = vld [vmem:[%s1160_s7 + $0x70] sm:$0xff]  ;;  %v388_v40 = vld [vmem:[%s1160_s7 + $0x78] sm:$0xff] }
  0xdf   : > { %312 = vperm.xlu1 %808, %v310_v43   ;;  %275 = vperm.xlu0 %807, %v273_v42   ;;  %v688_v42 = vpack.c.bf16 %v388_v40, %v387_v38  ;;  %v241_v43 = vlaneseq }
  0xe1   : > { %v814_v48 = vpop.eup %813 }
  0xe2   : > { %v816_v49 = vpop.eup %815  ;;  %v260_v50 = vmul.f32 %v814_v48, %v258_v32 }
  0xe3   : > { %v324_v52 = vmul.f32 %v816_v49, %v322_v33  ;;  %338 = vperm.xlu1 %808, %v336_v44   ;;  %810 = vset.pattern.permute.xlu0 %v990_v5  ;;  %v244_v44 = vstv %s608_s20 }
  0xe4   : > { %v262_v57 = vsel %vm261_vm7, %v258_v32, %v260_v50  ;;  %v386_v32 = vld [vmem:[%s1160_s7 + $0x68] sm:$0xff] }
  0xe5   : > { %v818_v60 = vpop.eup %817  ;;  %v265_v61 = vsel %vm263_vm9, %v264_v51, %v262_v57  ;;  %v326_v62 = vsel %vm325_vm8, %v322_v33, %v324_v52  ;;  %v685_v33 = vpack.c.bf16 %v386_v32, %v385_v31 }
  0xe6   : > { %v820_v63 = vpop.eup %819  ;;  %v299_v0 = vmul.f32 %v818_v60, %v297_v36  ;;  %v266_v1 = vadd.f32 1e-10, %v265_v61  ;;  %v329_v3 = vsel %vm327_vm11, %v328_v56, %v326_v62  ;;  %v372_v56 = vld [vmem:[#allocation2] sm:$0xff]  ;;  %v997_v60 = vmov (!%p609_p7), 0  }
  0xe7   : > { %v350_v7 = vmul.f32 %v820_v63, %v1209_v37  ;;  %809 = vset.pattern.permute.xlu1 %v990_v5  ;;  %v330_v8 = vadd.f32 1e-10, %v329_v3  ;;  %686 = vmatpush3.bf16.msra.mxu0 %v685_v33 }
  0xe8   : > { %821 = vrcp.f32 %v266_v1  ;;  %v301_v10 = vsel %vm300_vm10, %v297_v36, %v299_v0  ;;  %v360_v36 = vadd.s32 %v1213_v41, %v309_v39  ;;  %687 = vmatprep.subr.bf16.mxu0 %v994_v26  ;;  %v242_v39 = vand.u32 127, %v241_v43 }
  0xe9   : > { %v304_v11 = vsel %vm302_vm13, %v303_v6, %v301_v10  ;;  %v352_v12 = vsel %vm351_vm12, %v1209_v37, %v350_v7  ;;  %823 = vrcp.f32 %v330_v8 }
  0xea   : > { %v305_v13 = vadd.f32 1e-10, %v304_v11  ;;  %v355_v14 = vsel %vm353_vm15, %v354_v9, %v352_v12 }
  0xeb   : > { %v356_v16 = vadd.f32 1e-10, %v355_v14  ;;  %689 = vmatpush3.bf16.msra.mxu0 %v688_v42 }
  0xec   : > { %825 = vrcp.f32 %v305_v13 }
  0xed   : > { %827 = vrcp.f32 %v356_v16 }
  0xf2   : > { %v822_v17 = vpop.eup %821 }
  0xf3   : > { %v268_v20 = vmul.f32 %v822_v17, %v607_v19  ;;  %v824_v21 = vpop.eup %823 }
  0xf4   : > { %v332_v2 = vmul.f32 %v824_v21, %v607_v19 }
  0xf5   : > { %280 = vperm.xlu1 %809, %v268_v20  }
  0xf6   : > { %v826_v25 = vpop.eup %825 }
  0xf7   : > { %v307_v28 = vmul.f32 %v826_v25, %v607_v19  ;;  %v828_v29 = vpop.eup %827 }
  0xf8   : > { %v358_v35 = vmul.f32 %v828_v29, %v607_v19 }
  0xf9   : > { %317 = vperm.xlu0 %810, %v307_v28   ;;  %v308_v30 = vadd.f32 %v307_v28, %v268_v20  ;;  %343 = vperm.xlu1 %809, %v332_v2  }
  0xfb   : > { %v333_v34 = vadd.f32 %v332_v2, %v308_v30 }
  0xfd   : > { %811 = vset.pattern.permute.xlu0 %v993_v22  ;;  %v359_v37 = vadd.f32 %v358_v35, %v333_v34  ;;  %367 = vperm.xlu1 %809, %v358_v35   ;;  %v245_v22 = vadd.s32 %v244_v44, %v242_v39 }
  0xfe   : > { %362 = vperm.xlu0 %811, %v360_v36  }
  0xff   : > { %vm465_vm8 = vcmp.eq.f32.partialorder (!%p609_p7), %v359_v37, 0.0 }
 0x100   : > { %v466_v61 = vsel (!%p609_p7), %vm465_vm8, 1.0, %v359_v37 }
 0x101   : > { %830 = vrcp.f32 (!%p609_p7), %v466_v61 }
 0x102   : > { %812 = vset.pattern.permute.xlu0 %v990_v5 }
 0x103   : > { %829 = vset.pattern.permute.xlu0 (!%p609_p7), %v997_v60 }
 0x10b   : > { %v831_v62 = vpop.eup (!%p609_p7), %830 }
 0x10c   : > { %471 = vperm.xlu0 (!%p609_p7), %829, %v831_v62  }
 0x15e   : > { %v313_v15 = vpop.permute.xlu1 %312  ;;  %v276_v45 = vpop.permute.xlu0 %275 }
 0x15f   : > { %vm314_vm4 = vcmp.eq.s32.totalorder %v245_v22, %v313_v15  ;;  %vm277_vm5 = vcmp.eq.s32.totalorder %v245_v22, %v276_v45 }
 0x162   : > { %v339_v41 = vpop.permute.xlu1 %338 }
 0x163   : > { %vm340_vm6 = vcmp.eq.s32.totalorder %v245_v22, %v339_v41 }
 0x174   : > { %v281_v46 = vpop.permute.xlu1 %280 }
 0x175   : > { %v283_v26 = vsel %vm277_vm5, %v281_v46, 0.0 }
 0x178   : > { %v318_v47 = vpop.permute.xlu0 %317  ;;  %v344_v48 = vpop.permute.xlu1 %343 }
 0x179   : > { %v320_v49 = vsel %vm314_vm4, %v318_v47, 0.0  ;;  %v346_v51 = vsel %vm340_vm6, %v344_v48, 0.0 }
 0x17a   : > { %v321_v50 = vadd.f32 %v320_v49, %v283_v26 }
 0x17c   : > { %v347_v5 = vadd.f32 %v346_v51, %v321_v50  ;;  %v368_v53 = vpop.permute.xlu1 %367 }
 0x17d   : > { %v363_v52 = vpop.permute.xlu0 %362 }
 0x17e   : > { %vm364_vm7 = vcmp.eq.s32.totalorder %v245_v22, %v363_v52 }
 0x17f   : > { %v370_v54 = vsel %vm364_vm7, %v368_v53, 0.0 }
 0x180   : > { %v371_v55 = vadd.f32 %v370_v54, %v347_v5 }
 0x182   : > { %664 = vmatmul.mubr.f32.vlgmr.msra.gmra.mrb[0].mxu0 %v371_v55 }
 0x18b   : > { %v472_v0 = vpop.permute.xlu0 (!%p609_p7), %471 }
 0x252   : > { %464 = sbr.rel (%p609_p7) target bundleno = 611 (0x263), region = 40 }
 0x255   : > { %v455_v57 = vpop.f32.mrb[0].mxu0 }
 0x256   : > { %v459_v58 = vadd.f32 %v455_v57, %v372_v56  ;;  %v665_v59 = vpop.f32.mrb[1].mxu0 }
 0x258   : > { %460 = vst [vmem:[#allocation2] sm:$0xff] %v459_v58 }
 0x25f   : > { %v467_v63 = vld [vmem:[#allocation2] sm:$0xff] }
 0x260   : > { %v474_v1 = vmul.f32 %v472_v0, %v467_v63 }
 0x262   : > { %475 = vst [vmem:[%s207_s12] sm:$0xff] %v474_v1 }
 0x263 PF: > { %s611_s15 = sshll.u32 %s972_s16, 7  ;;  %s491_s24 = sshll.u32 %s207_s12, 4  ;;  %s492_s24 = int_to_ptr.vmem [resolvable:$true] %s491_s24 }
 0x264   : > { %s1264_s7 = scalar_lea.hbm %s1326_s2, %s611_s15  ;;  %s477_s8 = scalar_lea.sflag [#allocation5], %s205_s22 }
 0x265   : > { %s862_s27 = scalar_lea.vmem %s492_s24, 128  ;;  %p1337_p0 = scmp.ne.s32.totalorder %s1334_s3, 0 }
 0x266   : > { %p863_p4 = scmp.ne.s32.totalorder %s492_s24, %s862_s27  ;;  %s998_s21 = smov [#allocation6]  }
 0x267   : > { %s866_s26 = sshll.u32 %s998_s21, 4  ;;  %s867_s26 = int_to_ptr.vmem [resolvable:$false] %s866_s26 }
 0x268   : > { %p864_p1 = pnand %p863_p4, %p1337_p0  ;;  %s868_s28 = scalar_lea.vmem %s867_s26, 256 }
 0x269   : > { %p869_p6 = scmp.lt.s32.totalorder %s492_s24, %s867_s26  ;;  %p870_p9 = scmp.lt.s32.totalorder %s868_s28, %s862_s27 }
 0x26a   : > { %p865_p5 = pneg %p864_p1 }
 0x26b   : > { %p871_p10 = por %p870_p9, %p869_p6 }
 0x26d   : > { %p872_p11 = pnand %p871_p10, %p865_p5 }
 0x26f   : > { %875 = shalt.err (!%p872_p11)
}
 0x270   : > { %s876_s16 = scalar_lea.hbm %s1264_s7, 128  ;;  %s880_s12 = scalar_lea.hbm %s1326_s2, 256 }
 0x271   : > { %p877_p3 = scmp.ne.s32.totalorder %s1264_s7, %s876_s16  ;;  %p881_p12 = scmp.lt.u32.totalorder %s1264_s7, %s1326_s2 }
 0x272   : > { %p882_p2 = scmp.lt.u32.totalorder %s880_s12, %s876_s16  ;;  %p884_p4 = scmp.lt.u32.totalorder %s876_s16, %s1264_s7 }
 0x273   : > { %p878_p8 = pnand %p877_p3, %p1337_p0 }
 0x274   : > { %p883_p7 = por %p882_p2, %p881_p12 }
 0x275   : > { %p879_p13 = pneg %p878_p8 }
 0x276   : > { %p885_p1 = por %p884_p4, %p883_p7 }
 0x278   : > { %p886_p5 = pnand %p885_p1, %p879_p13 }
 0x27a   : > { %889 = shalt.err (!%p886_p5)
}
 0x27b   : > { %696 = dma.vmem_to_hbm [thread:$0]  (%p1337_p0), %s492_s24, 128, %s1264_s7, %s477_s8  }
 0x27c PF: > { %p707_p6 = scmp.ge.s32.totalorder %s984_s19, 2  ;;  %s503_s15 = sand.u32 1, %s944_s9  }
 0x27d   : > { %p1338_p9 = scmp.ne.s32.totalorder %s1335_s6, 0  ;;  %s504_s25 = scalar_lea.sflag [#allocation5], %s503_s15 }
 0x27f   : > { %p703_p10 = pnand %p707_p6, %p1338_p9 }
 0x281   : > { %939 = dma.done.wait (!%p703_p10), %s504_s25, 128  }
 0x282   : > { %941 = vsyncadd (!%p703_p10), %s504_s25, 4294967168  ;;  %s18_s19 = sadd.s32 1, %s984_s19   ;;  %s1339_s3 = sld [smem:[#allocation9_spill]] }
 0x283   : > { %p15_p11 = scmp.ge.s32.totalorder %s18_s19, 6   ;;  %s1340_s30 = sld [smem:[#allocation10_spill]] }
 0x284   : > { %s1341_s9 = smov %s948_s10  ;;  %s1342_s10 = smov %s952_s11 }
 0x285   : > { %s1343_s11 = smov %s1101_s4  ;;  %s1344_s12 = smov %s960_s13 }
 0x286   : > { %s1345_s13 = smov %s964_s14  ;;  %s1346_s14 = smov %s1104_s5 }
 0x287   : > { %s1347_s15 = smov %s976_s17  ;;  %s1348_s16 = smov %s980_s18 }
 0x288   : > { %s1349_s17 = smov %s1339_s3  ;;  %17 = sbr.rel (!%p15_p11) target bundleno = 9 (0x9), region = 84 }
 0x289   : > { %s1350_s18 = smov %s1340_s30 }
 0x28f   :  { %509 = vsyncpa [#allocation4], 1 }
 0x290   :  { %511 = vsyncpa [#allocation4 + $0x1], 1 }
 0x291   :  { %512 = vsyncpa [#allocation5], 1 }
 0x292   :  { %514 = vsyncpa [#allocation5 + $0x1], 1 }

</bundles_post_ra>
